<compile_context>
chip_gen: v7x
topology: tpu7x:2x2x1
jax: 0.10.0
libtpu: 0.0.40
codegen_flags: <defaults>
</compile_context>

<pallas_src>
import functools

import jax
import jax.numpy as jnp
from jax import lax
from jax.experimental import pallas as pl
from jax.experimental.pallas import tpu as pltpu

# ----------------------------- model sizes ---------------------------------
INPUT_DIM = 8            # node feature dim (col 0 = atomic number)
ATOM_EMBED_DIM = 16
MAX_ATOMIC_NUM = 100     # embedding table has MAX_ATOMIC_NUM + 1 rows
HIDDEN_DIMS = (32, 32, 32)
OUTPUT_DIM = 4
BN_EPS = 1e-5


# ------------------------------ Pallas kernel ------------------------------
def convgcn_kernel(A_ref, h1_ref, pmT_ref, Wstack_ref, WoutT_ref, vecs_ref,
                   out_ref, h_ref, pooled_ref, *, tile, a_resident):
    """Grid = (3 GCN phases, N/tile row blocks of target nodes).

    Per phase p (0..2):  x_blk = relu(A_blk @ hlin_{p+1} + t_{p+1})
      p < 2 : hlin_{p+2}[blk] = x_blk @ W'_{p+2} + b'_{p+2}   (BN pre-folded)
      p == 2: pooled += pmean_blk^T @ x_blk ; out = pooled @ Wout^T + bout
    """
    f32 = jnp.float32
    p = pl.program_id(0)             # GCN layer phase: 0, 1, 2
    i = pl.program_id(1)             # row block of target nodes
    nb = pl.num_programs(1)
    row0 = pl.multiple_of(i * tile, tile)

    # stage the wrapper-computed hlin_1 into slot 0 once (tiny N*H bf16 copy)
    @pl.when((p == 0) & (i == 0))
    def _stage_h1():
        h_ref[0] = h1_ref[...]

    # ----- aggregate this row block:  x = relu(A_blk @ hlin_{p+1} + t_{p+1})
    h_prev = h_ref[p]                                             # (N, H) bf16
    A_blk = A_ref[pl.ds(row0, tile), :] if a_resident else A_ref[...]
    agg = jnp.dot(A_blk, h_prev, preferred_element_type=f32)      # (tile, H) f32
    x = jnp.maximum(agg + vecs_ref[p], 0.0)                       # + t_{p+1}

    # ----- next layer's (BN-folded) linear, written back for this row block
    @pl.when(p < 2)
    def _next_linear():
        Wn = Wstack_ref[p & 1]                                    # p in {0,1} here
        h_next = jnp.dot(x, Wn, preferred_element_type=f32) + vecs_ref[3 + p]
        h_ref[p + 1, pl.ds(row0, tile), :] = h_next.astype(jnp.bfloat16)

    # ----- last layer: global mean pool (accumulate) + output head -----
    @pl.when(p == 2)
    def _pool():
        @pl.when(i == 0)
        def _():
            pooled_ref[...] = jnp.zeros_like(pooled_ref)

        pooled_ref[...] += lax.dot_general(
            pmT_ref[...], x, (((0,), (0,)), ((), ())),
            preferred_element_type=f32)                           # (G, H)

        @pl.when(i == nb - 1)
        def _():
            out_ref[...] = (jnp.dot(pooled_ref[...], WoutT_ref[...],
                                    preferred_element_type=f32)
                            + vecs_ref[5, :, :OUTPUT_DIM])


# ------------------------------ parameters ---------------------------------
def init_params(key):
    ks = jax.random.split(key, 32)
    p = {}
    p["emb"] = 0.1 * jax.random.normal(ks[0], (MAX_ATOMIC_NUM + 1, ATOM_EMBED_DIM), jnp.float32)
    p["Wo"] = 0.1 * jax.random.normal(ks[1], (ATOM_EMBED_DIM, INPUT_DIM - 1), jnp.float32)
    p["bo"] = 0.1 * jax.random.normal(ks[2], (1, ATOM_EMBED_DIM), jnp.float32)

    combined = 2 * ATOM_EMBED_DIM
    dims_in = (combined, HIDDEN_DIMS[0], HIDDEN_DIMS[1])
    k = 3
    for i in range(3):
        h = HIDDEN_DIMS[i]
        p[f"W{i+1}"] = 0.1 * jax.random.normal(ks[k], (h, dims_in[i]), jnp.float32); k += 1
        p[f"b{i+1}"] = 0.1 * jax.random.normal(ks[k], (1, h), jnp.float32); k += 1
        p[f"g{i+1}"] = 1.0 + 0.05 * jax.random.normal(ks[k], (1, h), jnp.float32); k += 1
        p[f"be{i+1}"] = 0.05 * jax.random.normal(ks[k], (1, h), jnp.float32); k += 1
        p[f"rm{i+1}"] = 0.05 * jax.random.normal(ks[k], (1, h), jnp.float32); k += 1
        p[f"rv{i+1}"] = 0.5 + jax.random.uniform(ks[k], (1, h), jnp.float32); k += 1
    p["Wout"] = 0.1 * jax.random.normal(ks[k], (OUTPUT_DIM, HIDDEN_DIMS[2]), jnp.float32); k += 1
    p["bout"] = 0.1 * jax.random.normal(ks[k], (1, OUTPUT_DIM), jnp.float32)
    return p


# ------------------------------- wrapper ------------------------------------
@functools.partial(jax.jit, static_argnames=("num_graphs", "tile"))
def convgcn_forward(params, x, edge_index, batch, num_graphs, tile=None):
    N = x.shape[0]
    H = HIDDEN_DIMS[0]
    G = num_graphs
    assert N % 16 == 0, "N must be a multiple of 16 (bf16 sublane tiling)"

    # ---- hoisted front end (plain XLA): embeddings, per-graph feature
    # ---- standardization, conv1 linear with BN1 folded  ->  hlin_1
    atomic = x[:, 0].astype(jnp.int32)
    feats = x[:, 1:].astype(jnp.float32)
    atom_embed = jnp.take(params["emb"], atomic, axis=0)             # (N, 16)

    bone = jax.nn.one_hot(batch, G, dtype=jnp.float32)               # (N, G)
    counts = jnp.maximum(bone.sum(axis=0), 1.0)
    pmeanT = bone / counts[None, :]                                  # (N, G) scatter-mean weights

    mean_n = bone @ (pmeanT.T @ feats)
    diff = feats - mean_n
    std_n = jnp.sqrt(bone @ (pmeanT.T @ (diff * diff)) + 1e-8)
    normed = diff / (std_n + 1e-8)
    other = jax.nn.relu(normed @ params["Wo"].T + params["bo"])      # (N, 16)
    comb = jnp.concatenate([atom_embed, other], axis=-1)             # (N, 32)

    # fold eval-mode BatchNorm into the conv linear weights and pre-transpose
    def fold(l):
        W, b = params[f"W{l}"], params[f"b{l}"]
        g, be = params[f"g{l}"], params[f"be{l}"]
        rm, rv = params[f"rm{l}"], params[f"rv{l}"]
        s = g / jnp.sqrt(rv + BN_EPS)                                # (1, h)
        return (W * s.T).T, b * s, be - rm * s                       # (in,h), (1,h), (1,h)

    W1f, b1f, t1 = fold(1)
    W2f, b2f, t2 = fold(2)
    W3f, b3f, t3 = fold(3)
    h1 = (comb @ W1f + b1f).astype(jnp.bfloat16)                     # hlin_1, (N, H)

    # GCN-normalized dense adjacency built directly in bf16 (target-major:
    # propagate == A @ h). deg from col, norm = deg^-1/2[row]*deg^-1/2[col].
    row, col = edge_index[0], edge_index[1]
    deg = jnp.zeros((N,), jnp.float32).at[col].add(1.0)
    dis = jnp.where(deg > 0, deg ** -0.5, 0.0)
    norm = (dis[row] * dis[col]).astype(jnp.bfloat16)
    A = jnp.zeros((N, N), jnp.bfloat16).at[col, row].add(norm)
    # TODO(synk): for large molecular graphs replace the dense O(N^2) adjacency
    # with a block-sparse / segment-sum aggregation path (and cache A for static graphs).

    Wstack = jnp.stack([W2f, W3f], axis=0)                           # (2, H, H)
    WoutT = params["Wout"].T                                         # (H, OUT)

    # pack the six small (1, ·) vectors into one (8, 1, H) input, indexed by phase:
    #   rows 0..2: t1..t3 (post-aggregation BN shift), rows 3..4: b2', b3', row 5: bout
    def padH(v):
        return jnp.pad(v, ((0, 0), (0, H - v.shape[1])))
    zrow = jnp.zeros((1, H), jnp.float32)
    vecs = jnp.stack([t1, t2, t3, b2f, b3f, padH(params["bout"]), zrow, zrow], axis=0)

    # ---- tile / A residency / VMEM budget (per-generation aware) -----------
    try:
        vmem_cap = int(pltpu.get_tpu_info().vmem_capacity_bytes)
    except Exception:  # conservative fallback (v7x-sized)
        vmem_cap = 64 * 1024 * 1024
    a_bytes = 2 * N * N                                   # bf16 adjacency
    # keep A fully VMEM-resident (DMA'd once, reused by all 3 phases) when the
    # possibly double-buffered copy stays well under budget on every generation
    a_resident = 2 * a_bytes <= min(24 * 1024 * 1024, vmem_cap // 3)
    if tile is None:
        tile = N if (a_resident or N <= 1024) else 256
    assert N % tile == 0 and tile % 16 == 0, "tile must divide N and be a multiple of 16"
    nb = N // tile

    if a_resident:
        a_spec = pl.BlockSpec((N, N), lambda p, i: (0, 0))           # resident, no re-stream
        a_vmem = 2 * a_bytes
    else:
        a_spec = pl.BlockSpec((tile, N), lambda p, i: (i, 0),        # streamed row blocks
                              pipeline_mode=pl.Buffered(3))
        a_vmem = 3 * 2 * tile * N

    est = (a_vmem + 2 * N * H * 2            # hlin_1 input (double-buffered)
           + 2 * tile * G * 4                # streamed pool weights
           + 3 * N * H * 2                   # hidden-state scratch (bf16)
           + G * H * 4 + 2 * H * H * 4 + H * OUTPUT_DIM * 4 + (1 << 16))
    vmem_limit = int(min(max(est * 5 // 4, 32 * 1024 * 1024), vmem_cap * 3 // 4))

    full2 = lambda p, i: (0, 0)
    grid_spec = pltpu.PrefetchScalarGridSpec(
        num_scalar_prefetch=0,
        grid=(3, nb),                                        # (layer phase, row block)
        in_specs=[
            a_spec,                                          # A (bf16)
            pl.BlockSpec((N, H), full2),                     # hlin_1 (bf16)
            pl.BlockSpec((tile, G), lambda p, i: (i, 0)),    # mean-pool weights (streamed)
            pl.BlockSpec((2, H, H), lambda p, i: (0, 0, 0)), # W2', W3' (BN-folded, transposed)
            pl.BlockSpec((H, OUTPUT_DIM), full2),            # Wout^T
            pl.BlockSpec((8, 1, H), lambda p, i: (0, 0, 0)), # packed bias / BN-shift vectors
        ],
        out_specs=pl.BlockSpec((G, OUTPUT_DIM), full2),
        scratch_shapes=[
            pltpu.VMEM((3, N, H), jnp.bfloat16),   # hlin_1..3 (single bf16 buffer, slot = layer)
            pltpu.VMEM((G, H), jnp.float32),       # pooled accumulator
        ],
    )
    # Both grid axes carry state through the scratch buffers, so they stay
    # "arbitrary" (sequential).
    # TODO(synk): on v7x, shard the row-block axis across the two TensorCores
    # (per-core pooled partials + a small combine) once graphs are large enough
    # for a single core to be compute-bound.
    kernel = functools.partial(convgcn_kernel, tile=tile, a_resident=a_resident)
    return pl.pallas_call(
        kernel,
        out_shape=jax.ShapeDtypeStruct((G, OUTPUT_DIM), jnp.float32),
        grid_spec=grid_spec,
        compiler_params=pltpu.CompilerParams(
            dimension_semantics=("arbitrary", "arbitrary"),
            vmem_limit_bytes=vmem_limit),
    )(A, h1, pmeanT, Wstack, WoutT, vecs)


# --------------------------- pure-JAX reference ------------------------------
def convgcn_reference(params, x, edge_index, batch, num_graphs):
    N = x.shape[0]
    atomic = x[:, 0].astype(jnp.int32)
    feats = x[:, 1:].astype(jnp.float32)
    bone = jax.nn.one_hot(batch, num_graphs, dtype=jnp.float32)
    counts = jnp.maximum(bone.sum(axis=0), 1.0)
    pmean = (bone / counts[None, :]).T
    mean_n = bone @ (pmean @ feats)
    diff = feats - mean_n
    var_n = bone @ (pmean @ (diff * diff))
    normed = diff / (jnp.sqrt(var_n + 1e-8) + 1e-8)
    atom_embed = params["emb"][atomic]
    other_embed = jax.nn.relu(normed @ params["Wo"].T + params["bo"])
    h = jnp.concatenate([atom_embed, other_embed], axis=-1)

    row, col = edge_index[0], edge_index[1]
    deg = jnp.zeros((N,), jnp.float32).at[col].add(1.0)
    dis = jnp.where(deg > 0, deg ** -0.5, 0.0)
    norm = dis[row] * dis[col]
    A = jnp.zeros((N, N), jnp.float32).at[col, row].add(norm)

    for l in range(1, 4):
        hlin = h @ params[f"W{l}"].T + params[f"b{l}"]
        agg = A @ hlin
        bn = ((agg - params[f"rm{l}"]) / jnp.sqrt(params[f"rv{l}"] + BN_EPS)
              * params[f"g{l}"] + params[f"be{l}"])
        h = jax.nn.relu(bn)
    pooled = pmean @ h
    return pooled @ params["Wout"].T + params["bout"]


# --------------------------------- main -------------------------------------
if __name__ == "__main__":
    key = jax.random.PRNGKey(0)
    k_param, k_feat, k_atom = jax.random.split(key, 3)
    params = init_params(k_param)

    # synthetic batch: 4 graphs of 32 nodes each (bidirected rings) -> N = 128
    NODES_PER_GRAPH = 32
    NUM_GRAPHS = 4
    N = NODES_PER_GRAPH * NUM_GRAPHS

    atomic_nums = jax.random.randint(k_atom, (N,), 1, MAX_ATOMIC_NUM + 1)
    other = jax.random.normal(k_feat, (N, INPUT_DIM - 1), jnp.float32)
    x = jnp.concatenate([atomic_nums[:, None].astype(jnp.float32), other], axis=1)

    src, dst = [], []
    for g in range(NUM_GRAPHS):
        base = g * NODES_PER_GRAPH
        for i in range(NODES_PER_GRAPH):
            a, b = base + i, base + (i + 1) % NODES_PER_GRAPH
            src += [a, b]
            dst += [b, a]
    edge_index = jnp.array([src, dst], dtype=jnp.int32)               # (2, 256)
    batch = jnp.repeat(jnp.arange(NUM_GRAPHS, dtype=jnp.int32), NODES_PER_GRAPH)

    out = convgcn_forward(params, x, edge_index, batch, NUM_GRAPHS)
    jax.block_until_ready(out)
    assert out.shape == (NUM_GRAPHS, OUTPUT_DIM)

    ref = convgcn_reference(params, x, edge_index, batch, NUM_GRAPHS)
    max_err = float(jnp.max(jnp.abs(out - ref)))
    assert max_err < 5e-2, f"kernel vs reference mismatch: {max_err}"
    print("KERNEL_OK")
</pallas_src>

<mosaic_0001>
module attributes {stable_mosaic.version = 11 : i64} {
  func.func private @main(%arg0: i32) attributes {dimension_semantics = [#tpu.dimension_semantics<core_parallel>], iteration_bounds = array<i64: 2>, tpu.core_type = #tpu.core_type<sc_scalar_subcore>, window_params = []} {
    return
  }
}

module attributes {stable_mosaic.version = 11 : i64} {
  func.func private @main(%arg0: i32) attributes {dimension_semantics = [#tpu.dimension_semantics<core_parallel>], iteration_bounds = array<i64: 2>, tpu.core_type = #tpu.core_type<sc_scalar_subcore>, window_params = []} {
    return
  }
}

module attributes {stable_mosaic.version = 11 : i64} {
  func.func @convgcn_kernel(%arg0: i32, %arg1: i32, %arg2: memref<128x128xbf16, #tpu.memory_space<vmem>>, %arg3: memref<128x32xbf16, #tpu.memory_space<vmem>>, %arg4: memref<128x4xf32, #tpu.memory_space<vmem>>, %arg5: memref<2x32x32xf32, #tpu.memory_space<vmem>>, %arg6: memref<32x4xf32, #tpu.memory_space<vmem>>, %arg7: memref<8x1x32xf32, #tpu.memory_space<vmem>>, %arg8: memref<4x4xf32, #tpu.memory_space<vmem>>, %arg9: memref<3x128x32xbf16, #tpu.memory_space<vmem>>, %arg10: memref<4x32xf32, #tpu.memory_space<vmem>>) attributes {dimension_semantics = [#tpu.dimension_semantics<arbitrary>, #tpu.dimension_semantics<arbitrary>], iteration_bounds = array<i64: 3, 1>, scalar_prefetch = 0 : i64, scratch_operands = 2 : i64, tpu.core_type = #tpu.core_type<tc>, window_params = [{pipeline_mode = #tpu.pipeline_mode<synchronous>, transform_indices = @transform_0, window_bounds = array<i64: 128, 128>}, {pipeline_mode = #tpu.pipeline_mode<synchronous>, transform_indices = @transform_1, window_bounds = array<i64: 128, 32>}, {transform_indices = @transform_2, window_bounds = array<i64: 128, 4>}, {pipeline_mode = #tpu.pipeline_mode<synchronous>, transform_indices = @transform_3, window_bounds = array<i64: 2, 32, 32>}, {pipeline_mode = #tpu.pipeline_mode<synchronous>, transform_indices = @transform_4, window_bounds = array<i64: 32, 4>}, {pipeline_mode = #tpu.pipeline_mode<synchronous>, transform_indices = @transform_5, window_bounds = array<i64: 8, 1, 32>}, {pipeline_mode = #tpu.pipeline_mode<synchronous>, transform_indices = @transform_6, window_bounds = array<i64: 4, 4>}]} {
    %c128_i32 = arith.constant 128 : i32
    %0 = arith.muli %arg1, %c128_i32 : i32
    %1 = tpu.assume_multiple %0, 128 : i32
    %c0_i32 = arith.constant 0 : i32
    %2 = arith.cmpi eq, %arg0, %c0_i32 : i32
    %c0_i32_0 = arith.constant 0 : i32
    %3 = arith.cmpi eq, %arg1, %c0_i32_0 : i32
    %4 = arith.andi %2, %3 : i1
    %5 = arith.extui %4 : i1 to i32
    %c0_i32_1 = arith.constant 0 : i32
    %6 = arith.cmpi ne, %5, %c0_i32_1 : i32
    scf.if %6 {
      %c0_10 = arith.constant 0 : index
      %c0_11 = arith.constant 0 : index
      %26 = vector.load %arg3[%c0_10, %c0_11] : memref<128x32xbf16, #tpu.memory_space<vmem>>, vector<128x32xbf16>
      %c0_12 = arith.constant 0 : index
      %c0_13 = arith.constant 0 : index
      %c0_14 = arith.constant 0 : index
      %27 = vector.load %arg9[%c0_12, %c0_13, %c0_14] : memref<3x128x32xbf16, #tpu.memory_space<vmem>>, vector<1x128x32xbf16>
      %28 = vector.shape_cast %27 : vector<1x128x32xbf16> to vector<128x32xbf16>
      %29 = vector.shape_cast %26 : vector<128x32xbf16> to vector<1x128x32xbf16>
      tpu.vector_store %arg9[%c0_12, %c0_13, %c0_14], %29 {strides = array<i32>} : memref<3x128x32xbf16, #tpu.memory_space<vmem>>, vector<1x128x32xbf16>,
    } else {
    }
    %7 = arith.index_cast %arg0 : i32 to index
    %c0 = arith.constant 0 : index
    %c0_2 = arith.constant 0 : index
    %8 = vector.load %arg9[%7, %c0, %c0_2] : memref<3x128x32xbf16, #tpu.memory_space<vmem>>, vector<1x128x32xbf16>
    %9 = vector.shape_cast %8 : vector<1x128x32xbf16> to vector<128x32xbf16>
    %10 = arith.index_cast %1 : i32 to index
    %c0_3 = arith.constant 0 : index
    %11 = vector.load %arg2[%10, %c0_3] : memref<128x128xbf16, #tpu.memory_space<vmem>>, vector<128x128xbf16>
    %cst = arith.constant dense<0.000000e+00> : vector<128x32xf32>
    %12 = tpu.matmul %11, %9, %cst {dimension_numbers = #tpu.dot_dimension_numbers<[1], [0], [0], [1], [0, 0, 1, 1], [], []>} : vector<128x128xbf16>, vector<128x32xbf16>, vector<128x32xf32> -> vector<128x32xf32>
    %13 = arith.index_cast %arg0 : i32 to index
    %c0_4 = arith.constant 0 : index
    %c0_5 = arith.constant 0 : index
    %14 = vector.load %arg7[%13, %c0_4, %c0_5] : memref<8x1x32xf32, #tpu.memory_space<vmem>>, vector<1x1x32xf32>
    %15 = vector.shape_cast %14 : vector<1x1x32xf32> to vector<1x32xf32>
    %16 = vector.broadcast %15 : vector<1x32xf32> to vector<128x32xf32>
    %17 = arith.addf %12, %16 : vector<128x32xf32>
    %cst_6 = arith.constant 0.000000e+00 : f32
    %18 = vector.broadcast %cst_6 : f32 to vector<128x32xf32>
    %19 = arith.maximumf %17, %18 : vector<128x32xf32>
    %c2_i32 = arith.constant 2 : i32
    %20 = arith.cmpi slt, %arg0, %c2_i32 : i32
    %21 = arith.extui %20 : i1 to i32
    %c0_i32_7 = arith.constant 0 : i32
    %22 = arith.cmpi ne, %21, %c0_i32_7 : i32
    scf.if %22 {
      %c1_i32 = arith.constant 1 : i32
      %26 = arith.andi %arg0, %c1_i32 : i32
      %27 = arith.index_cast %26 : i32 to index
      %c0_10 = arith.constant 0 : index
      %c0_11 = arith.constant 0 : index
      %28 = vector.load %arg5[%27, %c0_10, %c0_11] : memref<2x32x32xf32, #tpu.memory_space<vmem>>, vector<1x32x32xf32>
      %29 = vector.shape_cast %28 : vector<1x32x32xf32> to vector<32x32xf32>
      %cst_12 = arith.constant dense<0.000000e+00> : vector<128x32xf32>
      %30 = tpu.matmul %19, %29, %cst_12 {dimension_numbers = #tpu.dot_dimension_numbers<[1], [0], [0], [1], [0, 0, 1, 1], [], []>} : vector<128x32xf32>, vector<32x32xf32>, vector<128x32xf32> -> vector<128x32xf32>
      %c3_i32 = arith.constant 3 : i32
      %31 = arith.addi %c3_i32, %arg0 : i32
      %32 = arith.index_cast %31 : i32 to index
      %c0_13 = arith.constant 0 : index
      %c0_14 = arith.constant 0 : index
      %33 = vector.load %arg7[%32, %c0_13, %c0_14] : memref<8x1x32xf32, #tpu.memory_space<vmem>>, vector<1x1x32xf32>
      %34 = vector.shape_cast %33 : vector<1x1x32xf32> to vector<1x32xf32>
      %35 = vector.broadcast %34 : vector<1x32xf32> to vector<128x32xf32>
      %36 = arith.addf %30, %35 : vector<128x32xf32>
      %37 = arith.truncf %36 : vector<128x32xf32> to vector<128x32xbf16>
      %c1_i32_15 = arith.constant 1 : i32
      %38 = arith.addi %arg0, %c1_i32_15 : i32
      %39 = arith.index_cast %38 : i32 to index
      %40 = arith.index_cast %1 : i32 to index
      %c0_16 = arith.constant 0 : index
      %41 = vector.load %arg9[%39, %40, %c0_16] : memref<3x128x32xbf16, #tpu.memory_space<vmem>>, vector<1x128x32xbf16>
      %42 = vector.shape_cast %41 : vector<1x128x32xbf16> to vector<128x32xbf16>
      %43 = vector.shape_cast %37 : vector<128x32xbf16> to vector<1x128x32xbf16>
      tpu.vector_store %arg9[%39, %40, %c0_16], %43 {strides = array<i32>} : memref<3x128x32xbf16, #tpu.memory_space<vmem>>, vector<1x128x32xbf16>,
    } else {
    }
    %c2_i32_8 = arith.constant 2 : i32
    %23 = arith.cmpi eq, %arg0, %c2_i32_8 : i32
    %24 = arith.extui %23 : i1 to i32
    %c0_i32_9 = arith.constant 0 : i32
    %25 = arith.cmpi ne, %24, %c0_i32_9 : i32
    scf.if %25 {
      %c0_i32_10 = arith.constant 0 : i32
      %26 = arith.cmpi eq, %arg1, %c0_i32_10 : i32
      %27 = arith.extui %26 : i1 to i32
      %c0_i32_11 = arith.constant 0 : i32
      %28 = arith.cmpi ne, %27, %c0_i32_11 : i32
      scf.if %28 {
        %cst_21 = arith.constant 0.000000e+00 : f32
        %37 = vector.broadcast %cst_21 : f32 to vector<4x32xf32>
        %c0_22 = arith.constant 0 : index
        %c0_23 = arith.constant 0 : index
        %38 = vector.load %arg10[%c0_22, %c0_23] : memref<4x32xf32, #tpu.memory_space<vmem>>, vector<4x32xf32>
        tpu.vector_store %arg10[%c0_22, %c0_23], %37 {strides = array<i32>} : memref<4x32xf32, #tpu.memory_space<vmem>>, vector<4x32xf32>,
      } else {
      }
      %c0_12 = arith.constant 0 : index
      %c0_13 = arith.constant 0 : index
      %29 = vector.load %arg10[%c0_12, %c0_13] : memref<4x32xf32, #tpu.memory_space<vmem>>, vector<4x32xf32>
      %c0_14 = arith.constant 0 : index
      %c0_15 = arith.constant 0 : index
      %30 = vector.load %arg4[%c0_14, %c0_15] : memref<128x4xf32, #tpu.memory_space<vmem>>, vector<128x4xf32>
      %cst_16 = arith.constant dense<0.000000e+00> : vector<4x32xf32>
      %31 = tpu.matmul %30, %19, %cst_16 {dimension_numbers = #tpu.dot_dimension_numbers<[0], [0], [1], [1], [0, 1, 1, 1], [], []>} : vector<128x4xf32>, vector<128x32xf32>, vector<4x32xf32> -> vector<4x32xf32>
      %32 = arith.addf %29, %31 : vector<4x32xf32>
      %c0_17 = arith.constant 0 : index
      %c0_18 = arith.constant 0 : index
      %33 = vector.load %arg10[%c0_17, %c0_18] : memref<4x32xf32, #tpu.memory_space<vmem>>, vector<4x32xf32>
      tpu.vector_store %arg10[%c0_17, %c0_18], %32 {strides = array<i32>} : memref<4x32xf32, #tpu.memory_space<vmem>>, vector<4x32xf32>,
      %c0_i32_19 = arith.constant 0 : i32
      %34 = arith.cmpi eq, %arg1, %c0_i32_19 : i32
      %35 = arith.extui %34 : i1 to i32
      %c0_i32_20 = arith.constant 0 : i32
      %36 = arith.cmpi ne, %35, %c0_i32_20 : i32
      scf.if %36 {
        %c0_21 = arith.constant 0 : index
        %c0_22 = arith.constant 0 : index
        %37 = vector.load %arg10[%c0_21, %c0_22] : memref<4x32xf32, #tpu.memory_space<vmem>>, vector<4x32xf32>
        %c0_23 = arith.constant 0 : index
        %c0_24 = arith.constant 0 : index
        %38 = vector.load %arg6[%c0_23, %c0_24] : memref<32x4xf32, #tpu.memory_space<vmem>>, vector<32x4xf32>
        %cst_25 = arith.constant dense<0.000000e+00> : vector<4x4xf32>
        %39 = tpu.matmul %37, %38, %cst_25 {dimension_numbers = #tpu.dot_dimension_numbers<[1], [0], [0], [1], [0, 0, 1, 1], [], []>} : vector<4x32xf32>, vector<32x4xf32>, vector<4x4xf32> -> vector<4x4xf32>
        %c5 = arith.constant 5 : index
        %c0_26 = arith.constant 0 : index
        %c0_27 = arith.constant 0 : index
        %40 = vector.load %arg7[%c5, %c0_26, %c0_27] : memref<8x1x32xf32, #tpu.memory_space<vmem>>, vector<1x1x4xf32>
        %41 = vector.shape_cast %40 : vector<1x1x4xf32> to vector<1x4xf32>
        %42 = vector.broadcast %41 : vector<1x4xf32> to vector<4x4xf32>
        %43 = arith.addf %39, %42 : vector<4x4xf32>
        %c0_28 = arith.constant 0 : index
        %c0_29 = arith.constant 0 : index
        %44 = vector.load %arg8[%c0_28, %c0_29] : memref<4x4xf32, #tpu.memory_space<vmem>>, vector<4x4xf32>
        tpu.vector_store %arg8[%c0_28, %c0_29], %43 {strides = array<i32>} : memref<4x4xf32, #tpu.memory_space<vmem>>, vector<4x4xf32>,
      } else {
      }
    } else {
    }
    return
  }
  func.func @transform_0(%arg0: i32, %arg1: i32) -> (i32, i32) {
    %c0_i32 = arith.constant 0 : i32
    %c0_i32_0 = arith.constant 0 : i32
    %c0_i32_1 = arith.constant 0 : i32
    return %c0_i32, %c0_i32_0 : i32, i32
  }
  func.func @transform_1(%arg0: i32, %arg1: i32) -> (i32, i32) {
    %c0_i32 = arith.constant 0 : i32
    %c0_i32_0 = arith.constant 0 : i32
    %c0_i32_1 = arith.constant 0 : i32
    return %c0_i32, %c0_i32_0 : i32, i32
  }
  func.func @transform_2(%arg0: i32, %arg1: i32) -> (i32, i32) {
    %c0_i32 = arith.constant 0 : i32
    %c0_i32_0 = arith.constant 0 : i32
    return %arg1, %c0_i32 : i32, i32
  }
  func.func @transform_3(%arg0: i32, %arg1: i32) -> (i32, i32, i32) {
    %c0_i32 = arith.constant 0 : i32
    %c0_i32_0 = arith.constant 0 : i32
    %c0_i32_1 = arith.constant 0 : i32
    %c0_i32_2 = arith.constant 0 : i32
    return %c0_i32, %c0_i32_0, %c0_i32_1 : i32, i32, i32
  }
  func.func @transform_4(%arg0: i32, %arg1: i32) -> (i32, i32) {
    %c0_i32 = arith.constant 0 : i32
    %c0_i32_0 = arith.constant 0 : i32
    %c0_i32_1 = arith.constant 0 : i32
    return %c0_i32, %c0_i32_0 : i32, i32
  }
  func.func @transform_5(%arg0: i32, %arg1: i32) -> (i32, i32, i32) {
    %c0_i32 = arith.constant 0 : i32
    %c0_i32_0 = arith.constant 0 : i32
    %c0_i32_1 = arith.constant 0 : i32
    %c0_i32_2 = arith.constant 0 : i32
    return %c0_i32, %c0_i32_0, %c0_i32_1 : i32, i32, i32
  }
  func.func @transform_6(%arg0: i32, %arg1: i32) -> (i32, i32) {
    %c0_i32 = arith.constant 0 : i32
    %c0_i32_0 = arith.constant 0 : i32
    %c0_i32_1 = arith.constant 0 : i32
    return %c0_i32, %c0_i32_0 : i32, i32
  }
}

</mosaic_0001>

<bundles_post_ra>
// kernel: convgcn_forward.1
= control target key start
LH: loop header
LB: loop body
LE: loop exit
PB: predicated region body
PF: predicated region fallthrough
CT: control target
= control target key end

     0   :  { %11 = vsyncpa [#allocation5], 0  ;;  %s1499_s21 = smov 0   ;;  %s1501_s22 = smov 0   ;;  %s1830_s0 = inlined_call_operand.vmem [shape: bf16[128,128], index: 0, kind: input, shape index: {}]   ;;  %s1831_s1 = inlined_call_operand.vmem [shape: bf16[128,32], index: 1, kind: input, shape index: {}]   ;;  %s1832_s2 = inlined_call_operand.vmem [shape: f32[128,4], index: 2, kind: input, shape index: {}]   ;;  %s1833_s3 = inlined_call_operand.vmem [shape: f32[2,32,32], index: 3, kind: input, shape index: {}]   ;;  %s1834_s4 = inlined_call_operand.vmem [shape: f32[32,4], index: 4, kind: input, shape index: {}]   ;;  %s1835_s5 = inlined_call_operand.vmem [shape: f32[8,1,32], index: 5, kind: input, shape index: {}]   ;;  %s1836_s6 = inlined_call_operand.hbm [shape: f32[4,4], index: 6, kind: output, shape index: {}]  }
   0x1   :  { %s1503_s23 = smov 0  }
   0x2 LB: > { %s1065_s24 = sadd.s32 4294967295, %s1458_s23   ;;  %s29_s25 = sadd.s32 1, %s1454_s22  ;;  %s1458_s23 = sphi %s1503_s23, %s17_s23   ;;  %s1454_s22 = sphi %s1501_s22, %s1839_s22   ;;  %s1450_s21 = sphi %s1499_s21, %s1838_s21  }
   0x3   : > { %p31_p0 = scmp.ge.s32.totalorder %s29_s25, 3  ;;  %p1068_p1 = scmp.ge.s32.totalorder %s1458_s23, 1 }
   0x4   : > { %p221_p2 = scmp.lt.s32.totalorder %s1458_s23, 4 }
   0x5   : > { %s1841_s25 = smov (%p31_p0, %s29_s25), 0 }
   0x6   : > { %p222_p3 = pnand %p1068_p1, %p221_p2 }
   0x7   : > { %p254_p4 = scmp.eq.s32.totalorder (!%p222_p3), %s1450_s21, 0 }
   0x8   : > { %225 = sbr.rel (%p222_p3) target bundleno = 1096 (0x448), region = 44 }
   0xf   : > { %259 = sbr.rel (!%p254_p4) target bundleno = 22 (0x16), region = 48  ;;  %v1390_v0 = vld [vmem:[%s1831_s1] sm:$0xff] (%p254_p4)   ;;  %vm324_vm0 = vcmask (%p254_p4), 261120   ;;  %v1391_v1 = vld [vmem:[%s1831_s1 + $0x8] sm:$0xff] (%p254_p4)   ;;  %v1392_v2 = vld [vmem:[%s1831_s1 + $0x10] sm:$0xff] (%p254_p4)  }
  0x10   : > { %325 = vst.msk [vmem:[#allocation2] sm:$0xff] (%p254_p4), %vm324_vm0, %v1390_v0  ;;  %326 = vst.msk [vmem:[#allocation2 + $0x8] sm:$0xff] (%p254_p4), %vm324_vm0, %v1391_v1  ;;  %v1393_v3 = vld [vmem:[%s1831_s1 + $0x18] sm:$0xff] (%p254_p4)   ;;  %v1394_v4 = vld [vmem:[%s1831_s1 + $0x20] sm:$0xff] (%p254_p4)  }
  0x11   : > { %327 = vst.msk [vmem:[#allocation2 + $0x10] sm:$0xff] (%p254_p4), %vm324_vm0, %v1392_v2  ;;  %328 = vst.msk [vmem:[#allocation2 + $0x18] sm:$0xff] (%p254_p4), %vm324_vm0, %v1393_v3  ;;  %v1395_v5 = vld [vmem:[%s1831_s1 + $0x28] sm:$0xff] (%p254_p4)   ;;  %v1396_v6 = vld [vmem:[%s1831_s1 + $0x30] sm:$0xff] (%p254_p4)  }
  0x12   : > { %329 = vst.msk [vmem:[#allocation2 + $0x20] sm:$0xff] (%p254_p4), %vm324_vm0, %v1394_v4  ;;  %330 = vst.msk [vmem:[#allocation2 + $0x28] sm:$0xff] (%p254_p4), %vm324_vm0, %v1395_v5  ;;  %v1397_v7 = vld [vmem:[%s1831_s1 + $0x38] sm:$0xff] (%p254_p4)  }
  0x13   : > { %331 = vst.msk [vmem:[#allocation2 + $0x30] sm:$0xff] (%p254_p4), %vm324_vm0, %v1396_v6  ;;  %332 = vst.msk [vmem:[#allocation2 + $0x38] sm:$0xff] (%p254_p4), %vm324_vm0, %v1397_v7 }
  0x16 PF: > { %s1128_s18 = sshll.u32 %s1450_s21, 6  ;;  %v1398_v8 = vld [vmem:[%s1830_s0] sm:$0xff]   ;;  %v1400_v18 = vld [vmem:[%s1830_s0 + $0x8] sm:$0xff]   ;;  %v1402_v20 = vld [vmem:[%s1830_s0 + $0x10] sm:$0xff]   ;;  %s364_s19 = scalar_lea.vmem %s1835_s5, %s1450_s21 }
  0x17   : > { %s1549_s26 = scalar_lea.vmem [#allocation2], %s1128_s18  ;;  %1204 = vmatprep.mubr.bf16.mxu0 %v1398_v8  ;;  %v1399_v11 = vld [vmem:[%s1830_s0 + $0x20] sm:$0xff]   ;;  %v1401_v19 = vld [vmem:[%s1830_s0 + $0x28] sm:$0xff]   ;;  %v1403_v21 = vld [vmem:[%s1830_s0 + $0x30] sm:$0xff]   ;;  %p1089_p5 = scmp.ge.s32.totalorder %s1450_s21, 2 }
  0x18   : > { %1212 = vmatprep.mubr.bf16.mxu1 %v1399_v11  ;;  %v1404_v22 = vld [vmem:[%s1830_s0 + $0x18] sm:$0xff]   ;;  %v1080_v24 = vld [vmem:[%s364_s19] ss:$0 sm:$0xff]  ;;  %s537_s20 = sand.u32 (!%p1089_p5), 1, %s1450_s21  ;;  %vm553_vm1 = vcmask (!%p1089_p5), 261120  }
  0x19   : > { %v1405_v23 = vld [vmem:[%s1830_s0 + $0x38] sm:$0xff]  }
  0x1a   : > { %v336_v9 = vld [vmem:[%s1549_s26] sm:$0xff]  ;;  %v337_v10 = vld [vmem:[%s1549_s26 + $0x8] sm:$0xff]  ;;  %v338_v12 = vld [vmem:[%s1549_s26 + $0x10] sm:$0xff] }
  0x1b   : > { %1188 = vmatprep.subr.bf16.mxu0 %v336_v9  ;;  %1336 = vmatprep.subr.bf16.mxu1 %v336_v9  ;;  %v339_v13 = vld [vmem:[%s1549_s26 + $0x18] sm:$0xff]  ;;  %v340_v14 = vld [vmem:[%s1549_s26 + $0x20] sm:$0xff]  ;;  %v341_v15 = vld [vmem:[%s1549_s26 + $0x28] sm:$0xff] }
  0x1c   : > { %1189 = vmatpush3.bf16.msra.mxu0 %v336_v9  ;;  %1344 = vmatpush3.bf16.msra.mxu1 %v336_v9  ;;  %v342_v16 = vld [vmem:[%s1549_s26 + $0x30] sm:$0xff]  ;;  %v343_v17 = vld [vmem:[%s1549_s26 + $0x38] sm:$0xff]  ;;  %s1090_s26 = sshll.u32 (!%p1089_p5), %s537_s20, 5 }
  0x1d   : > { %1190 = vmatprep.subr.bf16.mxu0 %v337_v10  ;;  %1337 = vmatprep.subr.bf16.mxu1 %v337_v10  ;;  %s539_s29 = scalar_lea.vmem (!%p1089_p5), %s1833_s3, %s1090_s26 }
  0x1e   : > { %v540_v9 = vld [vmem:[%s539_s29] sm:$0xff] (!%p1089_p5)  ;;  %v542_v11 = vld [vmem:[%s539_s29 + $0x10] sm:$0xff] (!%p1089_p5) }
  0x20   : > { %1191 = vmatpush3.bf16.msra.mxu0 %v337_v10  ;;  %1345 = vmatpush3.bf16.msra.mxu1 %v337_v10  ;;  %v541_v10 = vld [vmem:[%s539_s29 + $0x8] sm:$0xff] (!%p1089_p5) }
  0x21   : > { %1192 = vmatprep.subr.bf16.mxu0 %v338_v12  ;;  %1338 = vmatprep.subr.bf16.mxu1 %v338_v12 }
  0x24   : > { %1193 = vmatpush3.bf16.msra.mxu0 %v338_v12  ;;  %1346 = vmatpush3.bf16.msra.mxu1 %v338_v12  ;;  %v1298_v12 = vpack.c.bf16 (!%p1089_p5), %v541_v10, %v540_v9 }
  0x25   : > { %1194 = vmatprep.subr.bf16.mxu0 %v339_v13  ;;  %1339 = vmatprep.subr.bf16.mxu1 %v339_v13 }
  0x28   : > { %1195 = vmatpush3.bf16.msra.mxu0 %v339_v13  ;;  %1347 = vmatpush3.bf16.msra.mxu1 %v339_v13  ;;  %v543_v13 = vld [vmem:[%s539_s29 + $0x18] sm:$0xff] (!%p1089_p5) }
  0x29   : > { %1196 = vmatprep.subr.bf16.mxu0 %v340_v14  ;;  %1340 = vmatprep.subr.bf16.mxu1 %v340_v14 }
  0x2c   : > { %1197 = vmatpush3.bf16.msra.mxu0 %v340_v14  ;;  %1348 = vmatpush3.bf16.msra.mxu1 %v340_v14  ;;  %v1302_v14 = vpack.c.bf16 (!%p1089_p5), %v543_v13, %v542_v11 }
  0x2d   : > { %1198 = vmatprep.subr.bf16.mxu0 %v341_v15  ;;  %1341 = vmatprep.subr.bf16.mxu1 %v341_v15 }
  0x30   : > { %1199 = vmatpush3.bf16.msra.mxu0 %v341_v15  ;;  %1349 = vmatpush3.bf16.msra.mxu1 %v341_v15 }
  0x31   : > { %1200 = vmatprep.subr.bf16.mxu0 %v342_v16  ;;  %1342 = vmatprep.subr.bf16.mxu1 %v342_v16 }
  0x34   : > { %1201 = vmatpush3.bf16.msra.mxu0 %v342_v16  ;;  %1350 = vmatpush3.bf16.msra.mxu1 %v342_v16 }
  0x35   : > { %1202 = vmatprep.subr.bf16.mxu0 %v343_v17  ;;  %1343 = vmatprep.subr.bf16.mxu1 %v343_v17 }
  0x38   : > { %1203 = vmatpush3.bf16.msra.mxu0 %v343_v17  ;;  %1351 = vmatpush3.bf16.msra.mxu1 %v343_v17 }
  0x39   : > { %1299 = vmatprep.subr.bf16.mxu0 (!%p1089_p5), %v1298_v12  ;;  %1352 = vmatprep.subr.bf16.mxu1 (!%p1089_p5), %v1298_v12 }
  0x3b   : > { %1205 = vmatmul.mubr.bf16.vlgmr.msra.gmra.mrb[0].mxu0 %v1400_v18  ;;  %1213 = vmatmul.mubr.bf16.vlgmr.msra.gmra.mrb[0].mxu1 %v1401_v19 }
  0x3c   : > { %1208 = vmatprep.mubr.bf16.mxu0 %v1402_v20  ;;  %1216 = vmatprep.mubr.bf16.mxu1 %v1403_v21 }
  0x3d   : > { %1301 = vmatpush3.bf16.msra.mxu0 (!%p1089_p5), %v1298_v12  ;;  %1354 = vmatpush3.bf16.msra.mxu1 (!%p1089_p5), %v1298_v12 }
  0x3e   : > { %1303 = vmatprep.subr.bf16.mxu0 (!%p1089_p5), %v1302_v14  ;;  %1353 = vmatprep.subr.bf16.mxu1 (!%p1089_p5), %v1302_v14 }
  0x41   : > { %1305 = vmatpush3.bf16.msra.mxu0 (!%p1089_p5), %v1302_v14  ;;  %1355 = vmatpush3.bf16.msra.mxu1 (!%p1089_p5), %v1302_v14 }
  0x43   : > { %1209 = vmatmul.mubr.bf16.gmra.mrb[4].mxu0 %v1404_v22  ;;  %1217 = vmatmul.mubr.bf16.gmra.mrb[4].mxu1 %v1405_v23 }
 0x10e   : > { %v1206_v25 = vpop.f32.mrb[0].mxu0  ;;  %v1214_v26 = vpop.f32.mrb[0].mxu1 }
 0x10f   : > { %v1584_v27 = vadd.f32 %v1206_v25, %v1080_v24  ;;  %v1586_v28 = vadd.f32 %v1214_v26, %v1080_v24  ;;  %v454_v29 = vpop.f32.mrb[1].mxu0  ;;  %v486_v30 = vpop.f32.mrb[1].mxu1 }
 0x110   : > { %v1588_v31 = vadd.f32 %v1080_v24, %v454_v29  ;;  %v1590_v32 = vadd.f32 %v1080_v24, %v486_v30  ;;  %v1207_v33 = vpop.f32.mrb[2].mxu0  ;;  %v1215_v34 = vpop.f32.mrb[2].mxu1 }
 0x111   : > { %v519_v35 = vmax.f32 %v1584_v27, 0.0  ;;  %v527_v36 = vmax.f32 %v1586_v28, 0.0  ;;  %v1594_v37 = vadd.f32 %v1207_v33, %v1080_v24  ;;  %v1596_v38 = vadd.f32 %v1215_v34, %v1080_v24  ;;  %v457_v39 = vpop.f32.mrb[3].mxu0  ;;  %v489_v40 = vpop.f32.mrb[3].mxu1 }
 0x112   : > { %v517_v41 = vmax.f32 %v1588_v31, 0.0  ;;  %v525_v42 = vmax.f32 %v1590_v32, 0.0  ;;  %v1600_v43 = vadd.f32 %v1080_v24, %v457_v39  ;;  %v1602_v44 = vadd.f32 %v1080_v24, %v489_v40 }
 0x113   : > { %v520_v45 = vmax.f32 %v1594_v37, 0.0  ;;  %v528_v46 = vmax.f32 %v1596_v38, 0.0 }
 0x114   : > { %v518_v47 = vmax.f32 %v1600_v43, 0.0  ;;  %v526_v48 = vmax.f32 %v1602_v44, 0.0  ;;  %1228 = vmatprep.mubr.msk.f32.mxu0 (!%p1089_p5), %vm553_vm1, %v517_v41  ;;  %1240 = vmatprep.mubr.msk.f32.mxu1 (!%p1089_p5), %vm553_vm1, %v525_v42 }
 0x116   : > { %v1210_v49 = vpop.f32.mrb[4].mxu0  ;;  %v1218_v50 = vpop.f32.mrb[4].mxu1  ;;  %536 = sbr.rel (%p1089_p5) target bundleno = 503 (0x1f7), region = 52  ;;  %1229 = vmatmul.mubr.msk.f32.vlgmr.msra.gmra.mrb[0].mxu0 (!%p1089_p5), %vm553_vm1, %v518_v47  ;;  %1241 = vmatmul.mubr.msk.f32.vlgmr.msra.gmra.mrb[0].mxu1 (!%p1089_p5), %vm553_vm1, %v526_v48 }
 0x117   : > { %v1608_v51 = vadd.f32 %v1210_v49, %v1080_v24  ;;  %v1610_v52 = vadd.f32 %v1218_v50, %v1080_v24  ;;  %v470_v53 = vpop.f32.mrb[5].mxu0  ;;  %v502_v54 = vpop.f32.mrb[5].mxu1  ;;  %1231 = vmatprep.mubr.msk.f32.mxu0 (!%p1089_p5), %vm553_vm1, %v519_v35  ;;  %1243 = vmatprep.mubr.msk.f32.mxu1 (!%p1089_p5), %vm553_vm1, %v527_v36 }
 0x118   : > { %v1612_v55 = vadd.f32 %v1080_v24, %v470_v53  ;;  %v1614_v56 = vadd.f32 %v1080_v24, %v502_v54  ;;  %v1211_v57 = vpop.f32.mrb[6].mxu0  ;;  %v1219_v58 = vpop.f32.mrb[6].mxu1 }
 0x119   : > { %v523_v59 = vmax.f32 %v1608_v51, 0.0  ;;  %v531_v60 = vmax.f32 %v1610_v52, 0.0  ;;  %v1618_v61 = vadd.f32 %v1211_v57, %v1080_v24  ;;  %v1620_v62 = vadd.f32 %v1219_v58, %v1080_v24  ;;  %v473_v63 = vpop.f32.mrb[7].mxu0  ;;  %v505_v0 = vpop.f32.mrb[7].mxu1 }
 0x11a   : > { %v521_v1 = vmax.f32 %v1612_v55, 0.0  ;;  %v529_v2 = vmax.f32 %v1614_v56, 0.0  ;;  %v1624_v3 = vadd.f32 %v1080_v24, %v473_v63  ;;  %v1626_v4 = vadd.f32 %v1080_v24, %v505_v0  ;;  %1232 = vmatmul.mubr.msk.f32.gmra.mrb[2].mxu0 (!%p1089_p5), %vm553_vm1, %v520_v45  ;;  %1244 = vmatmul.mubr.msk.f32.gmra.mrb[2].mxu1 (!%p1089_p5), %vm553_vm1, %v528_v46 }
 0x11b   : > { %v524_v5 = vmax.f32 %v1618_v61, 0.0  ;;  %v532_v6 = vmax.f32 %v1620_v62, 0.0 }
 0x11c   : > { %v522_v7 = vmax.f32 %v1624_v3, 0.0  ;;  %v530_v8 = vmax.f32 %v1626_v4, 0.0  ;;  %1234 = vmatprep.mubr.msk.f32.mxu0 (!%p1089_p5), %vm553_vm1, %v521_v1  ;;  %1246 = vmatprep.mubr.msk.f32.mxu1 (!%p1089_p5), %vm553_vm1, %v529_v2 }
 0x11e   : > { %1235 = vmatmul.mubr.msk.f32.gmra.mrb[4].mxu0 %vm553_vm1, %v522_v7  ;;  %1247 = vmatmul.mubr.msk.f32.gmra.mrb[4].mxu1 %vm553_vm1, %v530_v8 }
 0x11f   : > { %1237 = vmatprep.mubr.msk.f32.mxu0 %vm553_vm1, %v523_v59  ;;  %1249 = vmatprep.mubr.msk.f32.mxu1 %vm553_vm1, %v531_v60 }
 0x122   : > { %1238 = vmatmul.mubr.msk.f32.gmra.mrb[6].mxu0 %vm553_vm1, %v524_v5  ;;  %1250 = vmatmul.mubr.msk.f32.gmra.mrb[6].mxu1 %vm553_vm1, %v532_v6 }
 0x1e9   : > { %v1230_v15 = vpop.f32.mrb[0].mxu0  ;;  %v1242_v16 = vpop.f32.mrb[0].mxu1 }
 0x1ea   : > { %v668_v17 = vpop.f32.mrb[1].mxu0  ;;  %v708_v18 = vpop.f32.mrb[1].mxu1 }
 0x1ed   : > { %v1233_v19 = vpop.f32.mrb[2].mxu0  ;;  %v1245_v20 = vpop.f32.mrb[2].mxu1 }
 0x1ee   : > { %v678_v21 = vpop.f32.mrb[3].mxu0  ;;  %v718_v22 = vpop.f32.mrb[3].mxu1 }
 0x1f1   : > { %v1236_v23 = vpop.f32.mrb[4].mxu0  ;;  %v1248_v24 = vpop.f32.mrb[4].mxu1 }
 0x1f2   : > { %v688_v25 = vpop.f32.mrb[5].mxu0  ;;  %v728_v26 = vpop.f32.mrb[5].mxu1 }
 0x1f5   : > { %v1239_v29 = vpop.f32.mrb[6].mxu0  ;;  %v1251_v30 = vpop.f32.mrb[6].mxu1 }
 0x1f6   : > { %v698_v33 = vpop.f32.mrb[7].mxu0  ;;  %v738_v34 = vpop.f32.mrb[7].mxu1 }
 0x1f7 PF: > { %p1119_p6 = scmp.ne.s32.totalorder %s1450_s21, 2 }
 0x1f8   : > { %v780_v39 = vld [vmem:[%s1832_s2] sm:$0xff] (!%p1119_p6)  ;;  %v1307_v40 = vpack.c.bf16 (!%p1119_p6), %v518_v47, %v517_v41  ;;  %v1460_v49 = vmov (!%p1119_p6), 0.0|0.0   ;;  %vm777_vm2 = vcmask (!%p1119_p6), 257024   ;;  %v781_v50 = vld [vmem:[%s1832_s2 + $0x8] sm:$0xff] (!%p1119_p6)  ;;  %v1310_v53 = vpack.c.bf16 (!%p1119_p6), %v520_v45, %v519_v35  ;;  %v782_v41 = vld [vmem:[%s1832_s2 + $0x10] sm:$0xff] (!%p1119_p6) }
 0x1f9   : > { %773 = sbr.rel (%p1119_p6) target bundleno = 1071 (0x42f), region = 56  ;;  %796 = vxpose.xlu0.b32.start [1/16] (narrow) (!%p1119_p6), %v780_v39, 8  ;;  %1306 = vmatprep.subr.bf16.mxu0 (!%p1119_p6), %v1460_v49  ;;  %v1461_v31 = vmov (!%p1119_p6), 0.0   ;;  %vm1462_vm3 = vmmov (!%p1119_p6), 0   ;;  %v1313_v27 = vpack.c.bf16 (!%p1119_p6), %v522_v7, %v521_v1  ;;  %v783_v35 = vld [vmem:[%s1832_s2 + $0x18] sm:$0xff] (!%p1119_p6)  ;;  %v1316_v37 = vpack.c.bf16 (!%p1119_p6), %v524_v5, %v523_v59  ;;  %v784_v43 = vld [vmem:[%s1832_s2 + $0x20] sm:$0xff] (!%p1119_p6) }
 0x1fa   : > { %1308 = vmatpush3.bf16.msra.mxu0 (!%p1119_p6), %v1307_v40  ;;  %1330 = vmatprep.subr.bf16.mxu1 (!%p1119_p6), %v1460_v49  ;;  %778 = vst.msk [vmem:[#allocation3] sm:$0xf] (!%p1119_p6), %vm777_vm2, %v1461_v31  ;;  %v1319_v45 = vpack.c.bf16 (!%p1119_p6), %v526_v48, %v525_v42  ;;  %v785_v47 = vld [vmem:[%s1832_s2 + $0x28] sm:$0xff] (!%p1119_p6)  ;;  %v1322_v51 = vpack.c.bf16 (!%p1119_p6), %v528_v46, %v527_v36  ;;  %v786_v32 = vld [vmem:[%s1832_s2 + $0x30] sm:$0xff] (!%p1119_p6)  ;;  %v787_v28 = vld [vmem:[%s1832_s2 + $0x38] sm:$0xff] (!%p1119_p6)  ;;  %vm917_vm4 = vcmask (!%p1119_p6), 261120  }
 0x1fb   : > { %1309 = vmatprep.subr.bf16.mxu0 (!%p1119_p6), %v1460_v49  ;;  %1284 = vmatprep.mubr.msk.f32.mxu0 (!%p1119_p6), %vm1462_vm3, %v1461_v31  ;;  %v1325_v42 = vpack.c.bf16 (!%p1119_p6), %v530_v8, %v529_v2  ;;  %v1328_v36 = vpack.c.bf16 (!%p1119_p6), %v532_v6, %v531_v60  ;;  %v788_v38 = vld [vmem:[%s1832_s2 + $0x40] sm:$0xff] (!%p1119_p6)  ;;  %v789_v44 = vld [vmem:[%s1832_s2 + $0x48] sm:$0xff] (!%p1119_p6)  ;;  %v790_v46 = vld [vmem:[%s1832_s2 + $0x50] sm:$0xff] (!%p1119_p6)  ;;  %vm991_vm5 = vcmask (!%p1119_p6), 27648  }
 0x1fc   : > { %1295 = vmatprep.mubr.msk.f32.mxu1 (!%p1119_p6), %vm1462_vm3, %v1461_v31  ;;  %v791_v48 = vld [vmem:[%s1832_s2 + $0x58] sm:$0xff] (!%p1119_p6)  ;;  %v792_v52 = vld [vmem:[%s1832_s2 + $0x60] sm:$0xff] (!%p1119_p6)  ;;  %v793_v54 = vld [vmem:[%s1832_s2 + $0x68] sm:$0xff] (!%p1119_p6) }
 0x1fd   : > { %797 = vxpose.xlu0.b32.cont [2/16] (narrow) (!%p1119_p6), %v781_v50, 8  ;;  %v794_v55 = vld [vmem:[%s1832_s2 + $0x70] sm:$0xff] (!%p1119_p6)  ;;  %v795_v56 = vld [vmem:[%s1832_s2 + $0x78] sm:$0xff] (!%p1119_p6)  ;;  %v905_v58 = vld [vmem:[%s1834_s4] sm:$0xff] (!%p1119_p6) }
 0x1fe   : > { %1311 = vmatpush3.bf16.msra.mxu0 (!%p1119_p6), %v1310_v53  ;;  %v906_v59 = vld [vmem:[%s1834_s4 + $0x8] sm:$0xff] (!%p1119_p6)  ;;  %v907_v61 = vld [vmem:[%s1834_s4 + $0x10] sm:$0xff] (!%p1119_p6)  ;;  %v908_v62 = vld [vmem:[%s1834_s4 + $0x18] sm:$0xff] (!%p1119_p6) }
 0x1ff   : > { %1312 = vmatprep.subr.bf16.mxu0 (!%p1119_p6), %v1460_v49  ;;  %v1331_v60 = vpack.c.bf16 (!%p1119_p6), %v906_v59, %v905_v58  ;;  %v1334_v63 = vpack.c.bf16 (!%p1119_p6), %v908_v62, %v907_v61  ;;  %v1121_v5 = vld [vmem:[%s1835_s5 + $0x5] ss:$0 sm:$0xff] (!%p1119_p6) }
 0x201   : > { %798 = vxpose.xlu0.b32.cont [3/16] (narrow) %v782_v41, 8  ;;  %1332 = vmatpush3.bf16.msra.mxu1 %v1331_v60  ;;  %v779_v0 = vld [vmem:[#allocation3] sm:$0xf] }
 0x202   : > { %1314 = vmatpush3.bf16.msra.mxu0 %v1313_v27  ;;  %1333 = vmatprep.subr.bf16.mxu1 %v1460_v49 }
 0x203   : > { %1315 = vmatprep.subr.bf16.mxu0 %v1460_v49 }
 0x205   : > { %799 = vxpose.xlu0.b32.cont [4/16] (narrow) %v783_v35, 8  ;;  %1335 = vmatpush3.bf16.msra.mxu1 %v1334_v63 }
 0x206   : > { %1317 = vmatpush3.bf16.msra.mxu0 %v1316_v37 }
 0x207   : > { %1318 = vmatprep.subr.bf16.mxu0 %v1460_v49 }
 0x209   : > { %800 = vxpose.xlu0.b32.cont [5/16] (narrow) %v784_v43, 8 }
 0x20a   : > { %1320 = vmatpush3.bf16.msra.mxu0 %v1319_v45 }
 0x20b   : > { %1321 = vmatprep.subr.bf16.mxu0 %v1460_v49 }
 0x20d   : > { %801 = vxpose.xlu0.b32.cont [6/16] (narrow) %v785_v47, 8 }
 0x20e   : > { %1323 = vmatpush3.bf16.msra.mxu0 %v1322_v51 }
 0x20f   : > { %1324 = vmatprep.subr.bf16.mxu0 %v1460_v49 }
 0x211   : > { %802 = vxpose.xlu0.b32.cont [7/16] (narrow) %v786_v32, 8 }
 0x212   : > { %1326 = vmatpush3.bf16.msra.mxu0 %v1325_v42 }
 0x213   : > { %1327 = vmatprep.subr.bf16.mxu0 %v1460_v49 }
 0x215   : > { %803 = vxpose.xlu0.b32.cont [8/16] (narrow) %v787_v28, 8 }
 0x216   : > { %1329 = vmatpush3.bf16.msra.mxu0 %v1328_v36 }
 0x219   : > { %804 = vxpose.xlu0.b32.cont [9/16] (narrow) %v788_v38, 8 }
 0x21d   : > { %805 = vxpose.xlu0.b32.cont [10/16] (narrow) %v789_v44, 8 }
 0x221   : > { %806 = vxpose.xlu0.b32.cont [11/16] (narrow) %v790_v46, 8 }
 0x225   : > { %807 = vxpose.xlu0.b32.cont [12/16] (narrow) %v791_v48, 8 }
 0x229   : > { %808 = vxpose.xlu0.b32.cont [13/16] (narrow) %v792_v52, 8 }
 0x22d   : > { %809 = vxpose.xlu0.b32.cont [14/16] (narrow) %v793_v54, 8 }
 0x231   : > { %810 = vxpose.xlu0.b32.cont [15/16] (narrow) %v794_v55, 8 }
 0x235   : > { %811 = vxpose.xlu0.b32.end [16/16] (narrow) %v795_v56, 8 }
 0x279   : > { %v812_v57 = vpop.trf.xlu0 }
 0x27a   : > { %1285 = vmatmul.mubr.f32.vlgmr.msra.gmra.mrb[0].mxu0 %v812_v57 }
 0x34d   : > { %v894_v1 = vpop.f32.mrb[0].mxu0 }
 0x34e   : > { %v898_v2 = vadd.f32 %v894_v1, %v779_v0  ;;  %v1286_v3 = vpop.f32.mrb[1].mxu0 }
 0x350   : > { %900 = vst.msk [vmem:[#allocation3] sm:$0xf] %vm777_vm2, %v898_v2 }
 0x357   : > { %v904_v4 = vld [vmem:[#allocation3] sm:$0xf] }
 0x358   : > { %1296 = vmatmul.mubr.msk.f32.vlgmr.msra.gmra.mrb[0].mxu1 %vm917_vm4, %v904_v4 }
 0x42b   : > { %v987_v6 = vpop.f32.mrb[0].mxu1 }
 0x42c   : > { %v988_v7 = vadd.f32 %v1121_v5, %v987_v6  ;;  %v1297_v8 = vpop.f32.mrb[1].mxu1 }
 0x42e   : > { %992 = vst.msk [vmem:[#allocation4] sm:$0xf] %vm991_vm5, %v988_v7 }
 0x42f PF: > { %p1795_p7 = scmp.eq.s32.totalorder %s1065_s24, 2  ;;  %s1463_s9 = smov [#allocation4]  }
 0x430   : > { %s1000_s21 = sshll.u32 %s1463_s9, 4  ;;  %s1001_s21 = int_to_ptr.vmem [resolvable:$true] %s1000_s21 }
 0x431   : > { %s1406_s10 = scalar_lea.vmem %s1001_s21, 64  ;;  %p1413_p11 = scmp.lt.s32.totalorder %s1001_s21, %s1001_s21 }
 0x432   : > { %p1407_p8 = scmp.ne.s32.totalorder %s1001_s21, %s1406_s10  ;;  %p1414_p12 = scmp.lt.s32.totalorder %s1406_s10, %s1406_s10 }
 0x434   : > { %p1408_p9 = pnand %p1407_p8, %p1795_p7  ;;  %p1415_p13 = por %p1414_p12, %p1413_p11 }
 0x436   : > { %p1409_p10 = pneg %p1408_p9 }
 0x438   : > { %p1416_p0 = pnand %p1415_p13, %p1409_p10 }
 0x43a   : > { %1419 = shalt.err (!%p1416_p0)
}
 0x43b   : > { %s1420_s24 = scalar_lea.hbm %s1836_s6, 64 }
 0x43c   : > { %p1421_p1 = scmp.ne.s32.totalorder %s1836_s6, %s1420_s24  ;;  %p1426_p4 = scmp.lt.u32.totalorder %s1420_s24, %s1836_s6 }
 0x43e   : > { %p1422_p2 = pnand %p1421_p1, %p1795_p7 }
 0x440   : > { %p1423_p3 = pneg %p1422_p2 }
 0x442   : > { %p1428_p5 = pnand %p1426_p4, %p1423_p3 }
 0x444   : > { %1431 = shalt.err (!%p1428_p5)
}
 0x445   : > { %1357 = dma.vmem_to_hbm [thread:$0]  (%p1795_p7), %s1001_s21, 64, %s1836_s6, [#allocation5]  }
 0x446   : > { %1445 = dma.done.wait (%p1795_p7), [#allocation5], 64  }
 0x447   : > { %1447 = vsyncadd (%p1795_p7), [#allocation5], 4294967232 }
 0x448 PF: > { %s17_s23 = sadd.s32 1, %s1458_s23   ;;  %s1838_s21 = smov %s1454_s22 }
 0x449   : > { %p14_p6 = scmp.ge.s32.totalorder %s17_s23, 5   ;;  %s1839_s22 = smov %s1841_s25 }
 0x44b   :  { %16 = sbr.rel (!%p14_p6) target bundleno = 2 (0x2), region = 98 }
 0x452   :  { %1013 = vsyncpa [#allocation5], 1 }
 0x453   :  { %1015 = vsyncpa [#allocation5 + $0x1], 1 }

</bundles_post_ra>
